<compile_context>
chip_gen: v7x
topology: tpu7x:2x2x1
jax: 0.10.0
libtpu: 0.0.40
codegen_flags: <defaults>
</compile_context>

<pallas_src>
import functools

import jax
import jax.numpy as jnp
from jax.experimental import pallas as pl
from jax.experimental.pallas import tpu as pltpu


def _round_up(x, m):
    return ((x + m - 1) // m) * m


def _round_down(x, m):
    return (x // m) * m


def _pad_rows(batch, dtype):
    # Sublane padding of a (B, N) VMEM block: 8 rows per 32-bit vreg,
    # sub-32-bit dtypes pack proportionally more rows.
    isz = jnp.dtype(dtype).itemsize
    return _round_up(batch, 8 * max(1, 4 // isz))


def _mel_dur_kernel(mel_o_ref, mel_t_ref, dp_ref, dt_ref,
                    out_mel_ref, out_dur_ref, acc_ref, *,
                    l_valid, tile_cols, acc_cols, num_t_chunk, mask_from,
                    compute_dtype):
    """Grid = (P, num_t_chunk).  Accumulates sum|mel_o - mel_t| over the valid
    flat columns of this core's tile range into a small f32 accumulator and,
    on the last tile, also reduces the duration SSE."""
    p = pl.program_id(0)
    t = pl.program_id(1)
    logical_tile = p * num_t_chunk + t
    n_chunks = tile_cols // acc_cols

    @pl.when(t == 0)
    def _():
        acc_ref[...] = jnp.zeros_like(acc_ref)

    def accumulate(masked):
        acc = acc_ref[...]
        # Columns of this logical tile that are still inside [0, min_len*M);
        # <= 0 for duplicate (clamped) tiles -> they contribute exactly zero.
        rem = l_valid - logical_tile * tile_cols
        for j in range(n_chunks):                      # unrolled at trace time
            lo = j * acc_cols
            o = mel_o_ref[:, lo:lo + acc_cols].astype(compute_dtype)
            tt = mel_t_ref[:, lo:lo + acc_cols].astype(compute_dtype)
            a = jnp.abs(o - tt)
            if masked:
                col = lo + jax.lax.broadcasted_iota(jnp.int32, a.shape, 1)
                # Select (not arithmetic masking) so padded garbage / NaNs
                # beyond the valid window can never leak into the sum.
                a = jnp.where(col < rem, a, jnp.zeros_like(a))
            acc = acc + a.astype(jnp.float32)
        acc_ref[...] = acc

    if mask_from is None:                 # every tile fully valid
        accumulate(False)
    elif mask_from <= 0:                  # every tile needs masking
        accumulate(True)
    else:                                 # only trailing tiles pay the mask
        @pl.when(logical_tile < mask_from)
        def _():
            accumulate(False)

        @pl.when(logical_tile >= mask_from)
        def _():
            accumulate(True)

    @pl.when(t == pl.num_programs(1) - 1)
    def _():
        mel_sum = jnp.sum(acc_ref[...])                       # single reduce
        out_mel_ref[...] = jnp.broadcast_to(
            mel_sum, out_mel_ref.shape).astype(jnp.float32)
        d = dp_ref[...].astype(jnp.float32) - dt_ref[...].astype(jnp.float32)
        dur_sum = jnp.sum(d * d)
        out_dur_ref[...] = jnp.broadcast_to(
            dur_sum, out_dur_ref.shape).astype(jnp.float32)


def _tiny_loss_kernel(mel_o_ref, mel_t_ref, dp_ref, dt_ref, out_ref, *,
                      mel_count, dur_count):
    """Un-gridded fallback for degenerate shapes (min_len * M < 128)."""
    mel = jnp.float32(0.0)
    if mel_count > 0:
        diff = (mel_o_ref[...].astype(jnp.float32)
                - mel_t_ref[...].astype(jnp.float32))
        mel = jnp.sum(jnp.abs(diff)) / jnp.float32(mel_count)
    d = dp_ref[...].astype(jnp.float32) - dt_ref[...].astype(jnp.float32)
    out_ref[0, 0] = mel + jnp.sum(d * d) / jnp.float32(dur_count)


def _tts_loss_tiny(mel_output, mel_target, duration_pred, duration_target,
                   min_len):
    B, _, M = mel_output.shape
    Bd, Td = duration_pred.shape
    l_valid = min_len * M
    if l_valid == 0:
        # TODO(synk): PyTorch L1Loss over an empty slice returns NaN; here the
        # mel term is dropped and only the duration MSE is returned.
        mo = jnp.zeros((B, 128), jnp.float32)
        mt = jnp.zeros((B, 128), jnp.float32)
        mel_count = 0
    else:
        mo = mel_output[:, :min_len, :].reshape(B, l_valid)
        mt = mel_target[:, :min_len, :].reshape(B, l_valid)
        mel_count = B * l_valid
    kernel = functools.partial(_tiny_loss_kernel,
                               mel_count=mel_count, dur_count=Bd * Td)
    out = pl.pallas_call(
        kernel,
        out_shape=jax.ShapeDtypeStruct((1, 1), jnp.float32),
        in_specs=[pl.BlockSpec(memory_space=pltpu.MemorySpace.VMEM)] * 4,
        out_specs=pl.BlockSpec(memory_space=pltpu.MemorySpace.SMEM),
    )(mo, mt, duration_pred, duration_target)
    return out[0, 0]


def tts_loss(mel_output, mel_target, duration_pred, duration_target,
             max_tile_cols=None):
    """Pallas TPU implementation of TTSLoss.forward.

    mel_output:  [B, T1, M]     mel_target: [B, T2, M]
    duration_*:  [B, T]
    Returns scalar f32:  mean|mel_o - mel_t| over [:, :min(T1,T2), :]
                         + mean((dur_pred - dur_target)^2).
    `max_tile_cols` is an optional tuning/test knob capping the flat tile.
    """
    B, T1, M = mel_output.shape
    Bt, T2, Mt = mel_target.shape
    assert B == Bt and M == Mt
    Bd, Td = duration_pred.shape
    assert duration_target.shape == (Bd, Td)

    min_len = min(T1, T2)
    l_valid = min_len * M

    if l_valid < 128:
        return _tts_loss_tiny(mel_output, mel_target,
                              duration_pred, duration_target, min_len)

    # Lane-dense view: collapse the contiguous (T, M) trailing dims (free,
    # layout-preserving reshape -> no HBM copy).
    mo = mel_output.reshape(B, T1 * M)
    mt = mel_target.reshape(B, T2 * M)

    # bf16 inputs: keep sub/abs in bf16 (v6e/v7x bf16 VALU), widen at the add.
    if mel_output.dtype == jnp.bfloat16 and mel_target.dtype == jnp.bfloat16:
        compute_dtype = jnp.bfloat16
    else:
        compute_dtype = jnp.float32

    # ---- tile sizing against the *sublane-padded* VMEM footprint ----------
    buf_bytes_per_col = sum(
        _pad_rows(B, a.dtype) * jnp.dtype(a.dtype).itemsize for a in (mo, mt))
    MEL_BUF_BUDGET = 16 * 1024 * 1024          # both inputs, double-buffered
    tile_cols = max(128, MEL_BUF_BUDGET // (2 * buf_bytes_per_col))
    tile_cols = min(tile_cols, l_valid)
    if max_tile_cols is not None:
        tile_cols = min(tile_cols, max(128, _round_down(max_tile_cols, 128)))

    # Accumulator ~8 f32 vregs regardless of batch size.
    acc_cols = max(128, _round_down((8 * 8 * 128) // _round_up(B, 8), 128))
    if tile_cols >= acc_cols:
        tile_cols = _round_down(tile_cols, acc_cols)
    else:
        tile_cols = _round_down(tile_cols, 128)
        acc_cols = tile_cols

    num_t = pl.cdiv(l_valid, tile_cols)
    # Frame-split parallel axis so both TensorCores get work on v7x even for
    # B == 1 (harmless on single-TC v5e/v6e: at most one extra masked step).
    P = 2 if num_t >= 2 else 1
    num_t_chunk = pl.cdiv(num_t, P)

    partial_last = (l_valid % tile_cols) != 0
    has_dups = P * num_t_chunk > num_t
    if not partial_last and not has_dups:
        mask_from = None
    else:
        mask_from = num_t - 1 if partial_last else num_t

    def mel_map(p, t):
        # Clamp duplicate tiles (odd num_t split) onto the last valid block;
        # their contribution is masked to zero inside the kernel.
        return (0, jnp.minimum(p * num_t_chunk + t, num_t - 1))

    kernel = functools.partial(
        _mel_dur_kernel,
        l_valid=l_valid, tile_cols=tile_cols, acc_cols=acc_cols,
        num_t_chunk=num_t_chunk, mask_from=mask_from,
        compute_dtype=compute_dtype)

    # Padded mel buffers + accumulator + duration blocks + outputs + margin.
    vmem_est = (2 * tile_cols * buf_bytes_per_col
                + _round_up(B, 8) * acc_cols * 4
                + 2 * 2 * _round_up(Bd, 8) * _round_up(Td, 128) * 4
                + 64 * 1024)
    vmem_limit = int(min(48 * 1024 * 1024,
                         max(32 * 1024 * 1024, vmem_est + 4 * 1024 * 1024)))

    out_mel, out_dur = pl.pallas_call(
        kernel,
        out_shape=(jax.ShapeDtypeStruct((P, 8, 128), jnp.float32),
                   jax.ShapeDtypeStruct((P, 8, 128), jnp.float32)),
        grid_spec=pltpu.PrefetchScalarGridSpec(
            num_scalar_prefetch=0,
            grid=(P, num_t_chunk),
            in_specs=[
                pl.BlockSpec((B, tile_cols), mel_map),
                pl.BlockSpec((B, tile_cols), mel_map),
                pl.BlockSpec((Bd, Td), lambda p, t: (0, 0)),
                pl.BlockSpec((Bd, Td), lambda p, t: (0, 0)),
            ],
            out_specs=[
                pl.BlockSpec((1, 8, 128), lambda p, t: (p, 0, 0)),
                pl.BlockSpec((1, 8, 128), lambda p, t: (p, 0, 0)),
            ],
            scratch_shapes=[pltpu.VMEM((B, acc_cols), jnp.float32)],
        ),
        compiler_params=pltpu.CompilerParams(
            dimension_semantics=("parallel", "arbitrary"),
            vmem_limit_bytes=vmem_limit),
    )(mo, mt, duration_pred, duration_target)

    mel_loss = jnp.sum(out_mel[:, 0, 0]) / jnp.float32(B * l_valid)
    dur_loss = out_dur[0, 0, 0] / jnp.float32(Bd * Td)
    return (mel_loss + dur_loss).astype(jnp.float32)


if __name__ == "__main__":
    key = jax.random.PRNGKey(0)

    def reference(mel_o, mel_t, dp, dt):
        mlen = min(mel_o.shape[1], mel_t.shape[1])
        mel = jnp.mean(jnp.abs(mel_o[:, :mlen].astype(jnp.float32)
                               - mel_t[:, :mlen].astype(jnp.float32)))
        dur = jnp.mean((dp.astype(jnp.float32) - dt.astype(jnp.float32)) ** 2)
        return mel + dur

    cases = [
        # Small, spec-like shapes (mismatched mel lengths -> min_len = 8).
        dict(B=2, M=32, T1=10, T2=8, Td=8, max_tile=None),
        # Exercises multi-tile grid, the 2-way parallel frame split, the
        # chunked accumulation loop and the masked partial last tile.
        dict(B=2, M=80, T1=300, T2=289, Td=16, max_tile=None),
        # Forced-small tiles: odd tile count -> clamped duplicate tile path.
        dict(B=2, M=32, T1=40, T2=37, Td=8, max_tile=512),
        # Degenerate tiny fallback path.
        dict(B=2, M=8, T1=5, T2=4, Td=8, max_tile=None),
    ]

    ok = True
    for i, c in enumerate(cases):
        key, k1, k2, k3, k4 = jax.random.split(key, 5)
        mel_o = jax.random.normal(k1, (c["B"], c["T1"], c["M"]), dtype=jnp.float32)
        mel_t = jax.random.normal(k2, (c["B"], c["T2"], c["M"]), dtype=jnp.float32)
        dp = jax.random.normal(k3, (c["B"], c["Td"]), dtype=jnp.float32)
        dt = jax.random.randint(k4, (c["B"], c["Td"]), 0, 10).astype(jnp.int32)

        got = jax.block_until_ready(
            tts_loss(mel_o, mel_t, dp, dt, max_tile_cols=c["max_tile"]))
        want = jax.block_until_ready(reference(mel_o, mel_t, dp, dt))
        if not jnp.allclose(got, want, rtol=1e-4, atol=1e-5):
            ok = False
            print(f"case {i}: MISMATCH got={got} want={want}")

    if ok:
        print("KERNEL_OK")
</pallas_src>

<mosaic_0001>
module attributes {stable_mosaic.version = 11 : i64} {
  func.func @_mel_dur_kernel(%arg0: i32, %arg1: i32, %arg2: memref<2x256xf32, #tpu.memory_space<vmem>>, %arg3: memref<2x256xf32, #tpu.memory_space<vmem>>, %arg4: memref<2x8xf32, #tpu.memory_space<vmem>>, %arg5: memref<2x8xi32, #tpu.memory_space<vmem>>, %arg6: memref<1x8x128xf32, #tpu.memory_space<vmem>>, %arg7: memref<1x8x128xf32, #tpu.memory_space<vmem>>, %arg8: memref<2x256xf32, #tpu.memory_space<vmem>>) attributes {dimension_semantics = [#tpu.dimension_semantics<parallel>, #tpu.dimension_semantics<arbitrary>], iteration_bounds = array<i64: 1, 1>, scalar_prefetch = 0 : i64, scratch_operands = 1 : i64, tpu.core_type = #tpu.core_type<tc>, window_params = [{transform_indices = @transform_0, window_bounds = array<i64: 2, 256>}, {transform_indices = @transform_1, window_bounds = array<i64: 2, 256>}, {pipeline_mode = #tpu.pipeline_mode<synchronous>, transform_indices = @transform_2, window_bounds = array<i64: 2, 8>}, {pipeline_mode = #tpu.pipeline_mode<synchronous>, transform_indices = @transform_3, window_bounds = array<i64: 2, 8>}, {transform_indices = @transform_4, window_bounds = array<i64: 1, 8, 128>}, {transform_indices = @transform_5, window_bounds = array<i64: 1, 8, 128>}]} {
    %c0_i32 = arith.constant 0 : i32
    %0 = arith.cmpi eq, %arg1, %c0_i32 : i32
    %1 = arith.extui %0 : i1 to i32
    %c0_i32_0 = arith.constant 0 : i32
    %2 = arith.cmpi ne, %1, %c0_i32_0 : i32
    scf.if %2 {
      %cst = arith.constant 0.000000e+00 : f32
      %13 = vector.broadcast %cst : f32 to vector<2x256xf32>
      %c0_10 = arith.constant 0 : index
      %c0_11 = arith.constant 0 : index
      %14 = vector.load %arg8[%c0_10, %c0_11] : memref<2x256xf32, #tpu.memory_space<vmem>>, vector<2x256xf32>
      tpu.vector_store %arg8[%c0_10, %c0_11], %13 {strides = array<i32>} : memref<2x256xf32, #tpu.memory_space<vmem>>, vector<2x256xf32>,
    } else {
    }
    %c0 = arith.constant 0 : index
    %c0_1 = arith.constant 0 : index
    %3 = vector.load %arg8[%c0, %c0_1] : memref<2x256xf32, #tpu.memory_space<vmem>>, vector<2x256xf32>
    %c0_2 = arith.constant 0 : index
    %c0_3 = arith.constant 0 : index
    %4 = vector.load %arg2[%c0_2, %c0_3] : memref<2x256xf32, #tpu.memory_space<vmem>>, vector<2x256xf32>
    %c0_4 = arith.constant 0 : index
    %c0_5 = arith.constant 0 : index
    %5 = vector.load %arg3[%c0_4, %c0_5] : memref<2x256xf32, #tpu.memory_space<vmem>>, vector<2x256xf32>
    %6 = arith.subf %4, %5 : vector<2x256xf32>
    %7 = math.absf %6 : vector<2x256xf32>
    %8 = arith.addf %3, %7 : vector<2x256xf32>
    %c0_6 = arith.constant 0 : index
    %c0_7 = arith.constant 0 : index
    %9 = vector.load %arg8[%c0_6, %c0_7] : memref<2x256xf32, #tpu.memory_space<vmem>>, vector<2x256xf32>
    tpu.vector_store %arg8[%c0_6, %c0_7], %8 {strides = array<i32>} : memref<2x256xf32, #tpu.memory_space<vmem>>, vector<2x256xf32>,
    %c0_i32_8 = arith.constant 0 : i32
    %10 = arith.cmpi eq, %arg1, %c0_i32_8 : i32
    %11 = arith.extui %10 : i1 to i32
    %c0_i32_9 = arith.constant 0 : i32
    %12 = arith.cmpi ne, %11, %c0_i32_9 : i32
    scf.if %12 {
      %c0_10 = arith.constant 0 : index
      %c0_11 = arith.constant 0 : index
      %13 = vector.load %arg8[%c0_10, %c0_11] : memref<2x256xf32, #tpu.memory_space<vmem>>, vector<2x256xf32>
      %14 = vector.shape_cast %13 : vector<2x256xf32> to vector<1x2x256xf32>
      %cst = arith.constant dense<0.000000e+00> : vector<1xf32>
      %15 = vector.multi_reduction <add>, %14, %cst [1, 2] : vector<1x2x256xf32> to vector<1xf32>
      %16 = vector.shape_cast %15 : vector<1xf32> to vector<1x1x1xf32>
      %17 = vector.extract %16[0, 0, 0] : f32 from vector<1x1x1xf32>
      %18 = vector.broadcast %17 : f32 to vector<1x8x128xf32>
      %c0_12 = arith.constant 0 : index
      %c0_13 = arith.constant 0 : index
      %c0_14 = arith.constant 0 : index
      %19 = vector.load %arg6[%c0_12, %c0_13, %c0_14] : memref<1x8x128xf32, #tpu.memory_space<vmem>>, vector<1x8x128xf32>
      tpu.vector_store %arg6[%c0_12, %c0_13, %c0_14], %18 {strides = array<i32>} : memref<1x8x128xf32, #tpu.memory_space<vmem>>, vector<1x8x128xf32>,
      %c0_15 = arith.constant 0 : index
      %c0_16 = arith.constant 0 : index
      %20 = vector.load %arg4[%c0_15, %c0_16] : memref<2x8xf32, #tpu.memory_space<vmem>>, vector<2x8xf32>
      %c0_17 = arith.constant 0 : index
      %c0_18 = arith.constant 0 : index
      %21 = vector.load %arg5[%c0_17, %c0_18] : memref<2x8xi32, #tpu.memory_space<vmem>>, vector<2x8xi32>
      %22 = arith.sitofp %21 : vector<2x8xi32> to vector<2x8xf32>
      %23 = arith.subf %20, %22 : vector<2x8xf32>
      %24 = arith.mulf %23, %23 : vector<2x8xf32>
      %25 = vector.shape_cast %24 : vector<2x8xf32> to vector<1x2x8xf32>
      %cst_19 = arith.constant dense<0.000000e+00> : vector<1xf32>
      %26 = vector.multi_reduction <add>, %25, %cst_19 [1, 2] : vector<1x2x8xf32> to vector<1xf32>
      %27 = vector.shape_cast %26 : vector<1xf32> to vector<1x1x1xf32>
      %28 = vector.extract %27[0, 0, 0] : f32 from vector<1x1x1xf32>
      %29 = vector.broadcast %28 : f32 to vector<1x8x128xf32>
      %c0_20 = arith.constant 0 : index
      %c0_21 = arith.constant 0 : index
      %c0_22 = arith.constant 0 : index
      %30 = vector.load %arg7[%c0_20, %c0_21, %c0_22] : memref<1x8x128xf32, #tpu.memory_space<vmem>>, vector<1x8x128xf32>
      tpu.vector_store %arg7[%c0_20, %c0_21, %c0_22], %29 {strides = array<i32>} : memref<1x8x128xf32, #tpu.memory_space<vmem>>, vector<1x8x128xf32>,
    } else {
    }
    return
  }
  func.func @transform_0(%arg0: i32, %arg1: i32) -> (i32, i32) {
    %c1_i32 = arith.constant 1 : i32
    %0 = arith.muli %arg0, %c1_i32 : i32
    %1 = arith.addi %0, %arg1 : i32
    %c0_i32 = arith.constant 0 : i32
    %2 = arith.minsi %1, %c0_i32 : i32
    %c0_i32_0 = arith.constant 0 : i32
    %c0_i32_1 = arith.constant 0 : i32
    return %c0_i32_0, %2 : i32, i32
  }
  func.func @transform_1(%arg0: i32, %arg1: i32) -> (i32, i32) {
    %c1_i32 = arith.constant 1 : i32
    %0 = arith.muli %arg0, %c1_i32 : i32
    %1 = arith.addi %0, %arg1 : i32
    %c0_i32 = arith.constant 0 : i32
    %2 = arith.minsi %1, %c0_i32 : i32
    %c0_i32_0 = arith.constant 0 : i32
    %c0_i32_1 = arith.constant 0 : i32
    return %c0_i32_0, %2 : i32, i32
  }
  func.func @transform_2(%arg0: i32, %arg1: i32) -> (i32, i32) {
    %c0_i32 = arith.constant 0 : i32
    %c0_i32_0 = arith.constant 0 : i32
    %c0_i32_1 = arith.constant 0 : i32
    return %c0_i32, %c0_i32_0 : i32, i32
  }
  func.func @transform_3(%arg0: i32, %arg1: i32) -> (i32, i32) {
    %c0_i32 = arith.constant 0 : i32
    %c0_i32_0 = arith.constant 0 : i32
    %c0_i32_1 = arith.constant 0 : i32
    return %c0_i32, %c0_i32_0 : i32, i32
  }
  func.func @transform_4(%arg0: i32, %arg1: i32) -> (i32, i32, i32) {
    %c0_i32 = arith.constant 0 : i32
    %c0_i32_0 = arith.constant 0 : i32
    %c0_i32_1 = arith.constant 0 : i32
    return %arg0, %c0_i32, %c0_i32_0 : i32, i32, i32
  }
  func.func @transform_5(%arg0: i32, %arg1: i32) -> (i32, i32, i32) {
    %c0_i32 = arith.constant 0 : i32
    %c0_i32_0 = arith.constant 0 : i32
    %c0_i32_1 = arith.constant 0 : i32
    return %arg0, %c0_i32, %c0_i32_0 : i32, i32, i32
  }
}

</mosaic_0001>

<bundles_post_ra>
// kernel: tpu_custom_call.1
= control target key start
LH: loop header
LB: loop body
LE: loop exit
PB: predicated region body
PF: predicated region fallthrough
CT: control target
= control target key end

     0   :  { %11 = vsyncpa [#allocation4], 0  ;;  %s374_s0 = inlined_call_operand.hbm [shape: f32[2,320], index: 0, kind: input, shape index: {}]   ;;  %s375_s1 = inlined_call_operand.hbm [shape: f32[2,256], index: 1, kind: input, shape index: {}]   ;;  %s376_s2 = inlined_call_operand.vmem [shape: f32[2,8], index: 2, kind: input, shape index: {}]   ;;  %s377_s3 = inlined_call_operand.vmem [shape: s32[2,8], index: 3, kind: input, shape index: {}]   ;;  %s378_s4 = inlined_call_operand.hbm [shape: f32[1,8,128], index: 4, kind: output, shape index: {0}]   ;;  %s379_s5 = inlined_call_operand.hbm [shape: f32[1,8,128], index: 5, kind: output, shape index: {1}]  }
   0x1   :  { %12 = vsyncpa [#allocation7], 0 }
   0x2   :  { %13 = vsyncpa [#allocation5], 0 }
   0x3   :  { %14 = vsyncpa [#allocation10], 0  ;;  %s275_s18 = smov [#allocation3]   ;;  %s276_s20 = smov [#allocation6]  }
   0x4   :  { %s33_s19 = sshll.u32 %s275_s18, 4  ;;  %s49_s21 = sshll.u32 %s276_s20, 4  ;;  %s34_s19 = int_to_ptr.vmem [resolvable:$true] %s33_s19  ;;  %s310_s21 = int_to_ptr.vmem [resolvable:$true] %s49_s21 }
   0x5   :  { %s179_s24 = scalar_lea.hbm %s374_s0, 64  ;;  %s181_s29 = scalar_lea.hbm %s374_s0, 96 }
   0x6   :  { %p180_p0 = scmp.ne.s32.totalorder %s374_s0, %s179_s24  ;;  %p182_p1 = scmp.lt.u32.totalorder %s181_s29, %s179_s24 }
   0x7   :  { %p183_p2 = scmp.lt.u32.totalorder %s179_s24, %s374_s0 }
   0x9   :  { %p184_p3 = por %p183_p2, %p182_p1 }
   0xb   :  { %p185_p4 = pnand %p184_p3, %p180_p0 }
   0xd   :  { %188 = shalt.err (!%p185_p4)
}
   0xe   :  { %s189_s7 = scalar_lea.vmem %s34_s19, 64  ;;  %p194_p6 = scmp.lt.s32.totalorder %s34_s19, %s34_s19 }
   0xf   :  { %p190_p5 = scmp.ne.s32.totalorder %s34_s19, %s189_s7  ;;  %p195_p7 = scmp.lt.s32.totalorder %s189_s7, %s189_s7 }
  0x11   :  { %p196_p8 = por %p195_p7, %p194_p6 }
  0x13   :  { %p197_p9 = pnand %p196_p8, %p190_p5 }
  0x15   :  { %200 = shalt.err (!%p197_p9)
}
  0x16   :  { %36 = dma.hbm_to_vmem [thread:$0]  %s374_s0, 64, %s34_s19, [#allocation4]  }
  0x17   :  { %s201_s12 = scalar_lea.hbm %s375_s1, 64 }
  0x18   :  { %p202_p10 = scmp.ne.s32.totalorder %s375_s1, %s201_s12  ;;  %p205_p11 = scmp.lt.u32.totalorder %s201_s12, %s375_s1 }
  0x1a   :  { %p207_p12 = pnand %p205_p11, %p202_p10 }
  0x1c   :  { %210 = shalt.err (!%p207_p12)
}
  0x1d   :  { %s211_s17 = scalar_lea.vmem %s310_s21, 64  ;;  %p216_p0 = scmp.lt.s32.totalorder %s310_s21, %s310_s21 }
  0x1e   :  { %p212_p13 = scmp.ne.s32.totalorder %s310_s21, %s211_s17  ;;  %p217_p1 = scmp.lt.s32.totalorder %s211_s17, %s211_s17 }
  0x20   :  { %p218_p2 = por %p217_p1, %p216_p0 }
  0x22   :  { %p219_p3 = pnand %p218_p2, %p212_p13 }
  0x24   :  { %222 = shalt.err (!%p219_p3)
}
  0x25   :  { %52 = dma.hbm_to_vmem [thread:$0]  %s375_s1, 64, %s310_s21, [#allocation7]  }
  0x26   :  { %267 = dma.done.wait [#allocation4], 64  }
  0x27   :  { %268 = vsyncadd [#allocation4], 4294967232 }
  0x28   :  { %269 = dma.done.wait [#allocation7], 64  }
  0x29   :  { %270 = vsyncadd [#allocation7], 4294967232  ;;  %v277_v0 = vmov 0.0   ;;  %v81_v1 = vld [vmem:[#allocation3] sm:$0xf]  ;;  %vm102_vm0 = vcmask 1041408  }
  0x2a   :  { %79 = vst [vmem:[#allocation2] sm:$0xf] %v277_v0  ;;  %v82_v2 = vld [vmem:[#allocation6] sm:$0xf]  ;;  %v118_v7 = vld [vmem:[%s377_s3] sm:$0x3] }
  0x2b   :  { %v83_v3 = vsub.f32 %v81_v1, %v82_v2  ;;  %v119_v8 = vcvt.s32.f32 %v118_v7  ;;  %v117_v9 = vld [vmem:[%s376_s2] sm:$0x3]  ;;  %vm122_vm1 = vcmask 58368   ;;  %s278_s2 = smov [#allocation8]   ;;  %s279_s23 = smov [#allocation9]  }
  0x2c   :  { %s141_s3 = sshll.u32 %s278_s2, 4  ;;  %s151_s24 = sshll.u32 %s279_s23, 4  ;;  %s142_s3 = int_to_ptr.vmem [resolvable:$true] %s141_s3  ;;  %s152_s24 = int_to_ptr.vmem [resolvable:$true] %s151_s24 }
  0x2d   :  { %v84_v5 = vand.u32 2147483647, %v83_v3  ;;  %v120_v10 = vsub.f32 %v117_v9, %v119_v8  ;;  %s223_s25 = scalar_lea.vmem %s142_s3, 128  ;;  %p228_p5 = scmp.lt.s32.totalorder %s142_s3, %s142_s3 }
  0x2e   :  { %p224_p4 = scmp.ne.s32.totalorder %s142_s3, %s223_s25  ;;  %p229_p6 = scmp.lt.s32.totalorder %s223_s25, %s223_s25 }
  0x2f   :  { %v121_v15 = vmul.f32 %v120_v10, %v120_v10 }
  0x30   :  { %p230_p7 = por %p229_p6, %p228_p5 }
  0x31   :  { %v80_v4 = vld [vmem:[#allocation2] sm:$0xf]  ;;  %v123_v17 = vsel %vm122_vm1, %v121_v15, 0.0 }
  0x32   :  { %v85_v6 = vadd.f32 %v84_v5, %v80_v4  ;;  %p231_p8 = pnand %p230_p7, %p224_p4 }
  0x34   :  { %86 = vst [vmem:[#allocation2] sm:$0xf] %v85_v6 }
  0x3b   :  { %v169_v11 = vld.sshfl [vmem:[#allocation2] sm:$0x33 pattern:$0x76325410] }
  0x3c   :  { %v99_v12 = vcombine.high %v169_v11, %v169_v11  ;;  %v103_v13 = vsel %vm102_vm0, %v169_v11, 0.0 }
  0x3e   :  { %v104_v14 = vsel %vm102_vm0, %v99_v12, 0.0 }
  0x3f   :  { %v105_v16 = vadd.f32 %v104_v14, %v103_v13 }
  0x41   :  { %106 = vadd.xlane.f32.xlu0 %v105_v16 }
  0x45   :  { %124 = vadd.xlane.f32.xlu0 %v123_v17 }
  0xce   :  { %v107_v18 = vpop.xlane.xlu0 %106 }
  0xcf   :  { %v108_v19 = vrot.slane %v107_v18, 4 }
  0xd1   :  { %v109_v20 = vadd.f32 %v108_v19, %v107_v18 }
  0xd2   :  { %v125_v21 = vpop.xlane.xlu0 %124 }
  0xd3   :  { %v110_v22 = vrot.slane %v109_v20, 2  ;;  %v126_v23 = vrot.slane %v125_v21, 4 }
  0xd5   :  { %v127_v24 = vadd.f32 %v126_v23, %v125_v21  ;;  %v111_v25 = vadd.f32 %v110_v22, %v109_v20 }
  0xd7   :  { %v128_v26 = vrot.slane %v127_v24, 2  ;;  %v112_v27 = vrot.slane %v111_v25, 1 }
  0xd9   :  { %v129_v28 = vadd.f32 %v128_v26, %v127_v24  ;;  %v113_v29 = vadd.f32 %v112_v27, %v111_v25 }
  0xdb   :  { %170 = vpush %v113_v29  ;;  %v130_v30 = vrot.slane %v129_v28, 1 }
  0xdd   :  { %v131_v31 = vadd.f32 %v130_v30, %v129_v28 }
  0xdf   :  { %172 = vpush %v131_v31 }
 0x10c   :  { %s171_s21 = spop %170 }
 0x10d   :  { %v115_v32 = vstv %s171_s21 }
 0x10e   :  { %116 = vst [vmem:[#allocation8] sm:$0xff] %v115_v32 }
 0x10f   :  { %234 = shalt.err (!%p231_p8)
}
 0x110   :  { %s235_s28 = scalar_lea.hbm %s378_s4, 128 }
 0x111   :  { %p236_p9 = scmp.ne.s32.totalorder %s378_s4, %s235_s28  ;;  %p239_p10 = scmp.lt.u32.totalorder %s235_s28, %s378_s4 }
 0x113   :  { %p241_p11 = pnand %p239_p10, %p236_p9 }
 0x115   :  { %244 = shalt.err (!%p241_p11)
}
 0x116   :  { %144 = dma.vmem_to_hbm [thread:$0]  %s142_s3, 128, %s378_s4, [#allocation5]  }
 0x117   :  { %s173_s10 = spop %172  ;;  %s245_s11 = scalar_lea.vmem %s152_s24, 128 }
 0x118   :  { %v133_v33 = vstv %s173_s10  ;;  %p246_p12 = scmp.ne.s32.totalorder %s152_s24, %s245_s11  ;;  %p250_p13 = scmp.lt.s32.totalorder %s152_s24, %s152_s24 }
 0x119   :  { %134 = vst [vmem:[#allocation9] sm:$0xff] %v133_v33  ;;  %p251_p0 = scmp.lt.s32.totalorder %s245_s11, %s245_s11 }
 0x11b   :  { %p252_p1 = por %p251_p0, %p250_p13 }
 0x11d   :  { %p253_p2 = pnand %p252_p1, %p246_p12 }
 0x11f   :  { %256 = shalt.err (!%p253_p2)
}
 0x120   :  { %s257_s14 = scalar_lea.hbm %s379_s5, 128 }
 0x121   :  { %p258_p3 = scmp.ne.s32.totalorder %s379_s5, %s257_s14  ;;  %p261_p4 = scmp.lt.u32.totalorder %s257_s14, %s379_s5 }
 0x123   :  { %p263_p5 = pnand %p261_p4, %p258_p3 }
 0x125   :  { %266 = shalt.err (!%p263_p5)
}
 0x126   :  { %154 = dma.vmem_to_hbm [thread:$0]  %s152_s24, 128, %s379_s5, [#allocation10]  }
 0x127   :  { %271 = dma.done.wait [#allocation5], 128  }
 0x128   :  { %272 = vsyncadd [#allocation5], 4294967168 }
 0x129   :  { %273 = dma.done.wait [#allocation10], 128  }
 0x12a   :  { %274 = vsyncadd [#allocation10], 4294967168 }
 0x12b   :  { %161 = vsyncpa [#allocation4], 1 }
 0x12c   :  { %162 = vsyncpa [#allocation7], 1 }
 0x12d   :  { %163 = vsyncpa [#allocation5], 1 }
 0x12e   :  { %164 = vsyncpa [#allocation10], 1 }

</bundles_post_ra>
